<compile_context>
chip_gen: v5e
topology: v5e:2x2
jax: 0.10.0
libtpu: 0.0.40
codegen_flags: <defaults>
</compile_context>

<pallas_src>
import functools

import jax
import jax.numpy as jnp
from jax.experimental import pallas as pl
from jax.experimental.pallas import tpu as pltpu

LANE = 128


def _bce_with_logits(x, y, pos_weight):
    # Numerically stable BCE-with-logits with pos_weight:
    #   loss = (1 - y) * x + (1 + (pw - 1) * y) * log(1 + exp(-x))
    softplus_negx = jnp.maximum(-x, 0.0) + jnp.log1p(jnp.exp(-jnp.abs(x)))
    return (1.0 - y) * x + (1.0 + (pos_weight - 1.0) * y) * softplus_negx


def _reduce_kernel(yp_ref, yt_ref, psum_ref, pcnt_ref, *,
                   ignore_value, pos_weight, n_valid, n_inner,
                   block_rows, acc_rows):
    """Per-tile masked loss folded into resident (acc_rows, LANE) accumulators."""
    i = pl.program_id(1)

    @pl.when(i == 0)
    def _init():
        psum_ref[...] = jnp.zeros_like(psum_ref)
        pcnt_ref[...] = jnp.zeros_like(pcnt_ref)

    x = yp_ref[...].astype(jnp.float32)
    y = yt_ref[...].astype(jnp.float32)

    # Global element index for this (possibly ragged / overflow) tile.
    tile_idx = pl.program_id(0) * n_inner + i
    base = tile_idx * (block_rows * LANE)
    rows = jax.lax.broadcasted_iota(jnp.int32, (block_rows, LANE), 0)
    cols = jax.lax.broadcasted_iota(jnp.int32, (block_rows, LANE), 1)
    gidx = base + rows * LANE + cols

    mask = jnp.logical_and(gidx < n_valid, y != ignore_value)

    loss = _bce_with_logits(x, y, pos_weight)
    mloss = jnp.where(mask, loss, 0.0)
    mcnt = mask.astype(jnp.float32)

    if acc_rows == 8:
        # Layout-preserving fold (block_rows, LANE) -> (8, LANE): pure VPU adds.
        mloss = mloss.reshape(block_rows // 8, 8, LANE).sum(axis=0)
        mcnt = mcnt.reshape(block_rows // 8, 8, LANE).sum(axis=0)
    else:
        mloss = mloss.sum(axis=0, keepdims=True)
        mcnt = mcnt.sum(axis=0, keepdims=True)

    psum_ref[...] += mloss
    pcnt_ref[...] += mcnt


def _elementwise_kernel(yp_ref, yt_ref, ew_ref, *,
                        ignore_value, pos_weight, n_valid, block_rows):
    """Per-tile masked elementwise loss written out (reduction='None' path)."""
    i = pl.program_id(0)

    x = yp_ref[...].astype(jnp.float32)
    y = yt_ref[...].astype(jnp.float32)

    base = i * (block_rows * LANE)
    rows = jax.lax.broadcasted_iota(jnp.int32, (block_rows, LANE), 0)
    cols = jax.lax.broadcasted_iota(jnp.int32, (block_rows, LANE), 1)
    gidx = base + rows * LANE + cols

    mask = jnp.logical_and(gidx < n_valid, y != ignore_value)
    loss = _bce_with_logits(x, y, pos_weight)
    ew_ref[...] = jnp.where(mask, loss, 0.0).astype(ew_ref.dtype)


def _choose_block_rows(total_rows, requested):
    requested = int(requested)
    if requested >= total_rows or total_rows <= 8:
        return total_rows            # full-extent block (always legal)
    return max(8, (requested // 8) * 8)


def classification_loss(y_pred, y_true, *, ignore_value=-1.0, reduction="mean",
                        pos_weight=1.0, block_rows=1024, num_shards=2):
    """Pallas-backed ClassificationLoss: ignore-mask + elementwise loss + reduction."""
    flat_p = y_pred.reshape(-1)
    flat_t = y_true.reshape(-1)
    n = flat_p.shape[0]

    lane_pad = (-n) % LANE
    if lane_pad:
        # Only needed when numel isn't a multiple of 128 (tiny pad, one copy).
        flat_p = jnp.pad(flat_p, (0, lane_pad))
        flat_t = jnp.pad(flat_t, (0, lane_pad),
                         constant_values=jnp.asarray(ignore_value, flat_t.dtype))

    total_rows = (n + lane_pad) // LANE
    yp2 = flat_p.reshape(total_rows, LANE)
    yt2 = flat_t.reshape(total_rows, LANE)

    br = _choose_block_rows(total_rows, block_rows)
    n_blocks = -(-total_rows // br)
    acc_rows = 8 if br % 8 == 0 else 1

    if reduction in ("mean", "sum"):
        nshards = max(1, min(int(num_shards), n_blocks))
        n_inner = -(-n_blocks // nshards)

        def in_map(c, i):
            # Clamp overflow tiles of the last shard back in range; their
            # contribution is zeroed in-kernel via the global-index mask.
            return (jnp.minimum(c * n_inner + i, n_blocks - 1), 0)

        kernel = functools.partial(
            _reduce_kernel,
            ignore_value=float(ignore_value), pos_weight=float(pos_weight),
            n_valid=n, n_inner=n_inner, block_rows=br, acc_rows=acc_rows)

        psum, pcnt = pl.pallas_call(
            kernel,
            out_shape=(
                jax.ShapeDtypeStruct((nshards, acc_rows, LANE), jnp.float32),
                jax.ShapeDtypeStruct((nshards, acc_rows, LANE), jnp.float32),
            ),
            grid_spec=pltpu.PrefetchScalarGridSpec(
                num_scalar_prefetch=0,
                grid=(nshards, n_inner),
                in_specs=[
                    pl.BlockSpec((br, LANE), in_map),
                    pl.BlockSpec((br, LANE), in_map),
                ],
                out_specs=[
                    pl.BlockSpec((None, acc_rows, LANE), lambda c, i: (c, 0, 0)),
                    pl.BlockSpec((None, acc_rows, LANE), lambda c, i: (c, 0, 0)),
                ],
            ),
            compiler_params=pltpu.CompilerParams(
                dimension_semantics=("parallel", "arbitrary")),
        )(yp2, yt2)

        total = jnp.sum(psum)
        if reduction == "sum":
            return total
        count = jnp.sum(pcnt)
        return total / jnp.maximum(count, 1.0)

    # reduction == 'None' path: write elementwise loss.
    kernel = functools.partial(
        _elementwise_kernel,
        ignore_value=float(ignore_value), pos_weight=float(pos_weight),
        n_valid=n, block_rows=br)

    ew = pl.pallas_call(
        kernel,
        out_shape=jax.ShapeDtypeStruct((total_rows, LANE), jnp.float32),
        grid_spec=pltpu.PrefetchScalarGridSpec(
            num_scalar_prefetch=0,
            grid=(n_blocks,),
            in_specs=[pl.BlockSpec((br, LANE), lambda i: (i, 0)),
                      pl.BlockSpec((br, LANE), lambda i: (i, 0))],
            out_specs=pl.BlockSpec((br, LANE), lambda i: (i, 0)),
        ),
        compiler_params=pltpu.CompilerParams(
            dimension_semantics=("parallel",)),
    )(yp2, yt2)

    # TODO(synk): PyTorch 'None' path returns a dynamically-filtered 1-D tensor
    # (variable length); here we return the full-length elementwise loss with
    # zeros at ignored positions.
    return ew.reshape(-1)[:n]


def _reference(y_pred, y_true, ignore_value, reduction, pos_weight):
    x = y_pred.reshape(-1).astype(jnp.float32)
    y = y_true.reshape(-1).astype(jnp.float32)
    mask = (y != ignore_value)
    loss = _bce_with_logits(x, y, pos_weight) * mask
    if reduction == "mean":
        return jnp.sum(loss) / jnp.maximum(jnp.sum(mask), 1)
    if reduction == "sum":
        return jnp.sum(loss)
    return loss


def _make_inputs(key, shape):
    k1, k2, k3 = jax.random.split(key, 3)
    y_pred = jax.random.normal(k1, shape, dtype=jnp.float32)
    y_true = jax.random.bernoulli(k2, 0.5, shape).astype(jnp.float32)
    ignore_mask = jax.random.bernoulli(k3, 0.2, shape)
    y_true = jnp.where(ignore_mask, -1.0, y_true)
    return y_pred, y_true


if __name__ == "__main__":
    IGNORE_VALUE = -1.0
    POS_WEIGHT = 1.5

    key = jax.random.PRNGKey(0)
    keys = jax.random.split(key, 4)

    # (shape, reduction, block_rows) — small shapes exercising the main paths:
    #  * default big-tile single block, 2-shard multi-block, clamped overflow
    #    tile, ragged (non-multiple-of-128) numel, and the 'None' path.
    cases = [
        ((2, 4, 16, 16), "mean", 8),     # 2 blocks, 2 shards
        ((2, 4, 16, 16), "sum", 1024),   # single full-extent block
        ((3, 4, 16, 16), "mean", 8),     # 3 blocks, 2 shards -> overflow tile
        ((2, 3, 10, 11), "mean", 8),     # numel not multiple of 128
        ((2, 4, 16, 16), "None", 8),     # elementwise path
    ]

    for idx, (shape, reduction, br) in enumerate(cases):
        y_pred, y_true = _make_inputs(keys[idx % len(keys)], shape)
        out = classification_loss(y_pred, y_true,
                                  ignore_value=IGNORE_VALUE,
                                  reduction=reduction,
                                  pos_weight=POS_WEIGHT,
                                  block_rows=br)
        out = jax.block_until_ready(out)
        ref = _reference(y_pred, y_true, IGNORE_VALUE, reduction, POS_WEIGHT)
        assert jnp.allclose(out, ref, rtol=1e-5, atol=1e-5), (shape, reduction, out, ref)

    print("KERNEL_OK")
</pallas_src>

<mosaic_0001>
module attributes {stable_mosaic.version = 11 : i64} {
  func.func @_reduce_kernel(%arg0: i32, %arg1: i32, %arg2: memref<8x128xf32, #tpu.memory_space<vmem>>, %arg3: memref<8x128xf32, #tpu.memory_space<vmem>>, %arg4: memref<1x8x128xf32, #tpu.memory_space<vmem>>, %arg5: memref<1x8x128xf32, #tpu.memory_space<vmem>>) attributes {dimension_semantics = [#tpu.dimension_semantics<parallel>, #tpu.dimension_semantics<arbitrary>], iteration_bounds = array<i64: 2, 1>, scalar_prefetch = 0 : i64, scratch_operands = 0 : i64, tpu.core_type = #tpu.core_type<tc>, window_params = [{transform_indices = @transform_0, window_bounds = array<i64: 8, 128>}, {transform_indices = @transform_1, window_bounds = array<i64: 8, 128>}, {transform_indices = @transform_2, window_bounds = array<i64: 1, 8, 128>}, {transform_indices = @transform_3, window_bounds = array<i64: 1, 8, 128>}]} {
    %c0_i32 = arith.constant 0 : i32
    %0 = arith.cmpi eq, %arg1, %c0_i32 : i32
    %1 = arith.extui %0 : i1 to i32
    %c0_i32_0 = arith.constant 0 : i32
    %2 = arith.cmpi ne, %1, %c0_i32_0 : i32
    scf.if %2 {
      %cst_25 = arith.constant 0.000000e+00 : f32
      %59 = vector.broadcast %cst_25 : f32 to vector<8x128xf32>
      %c0_26 = arith.constant 0 : index
      %c0_27 = arith.constant 0 : index
      %c0_28 = arith.constant 0 : index
      %60 = vector.load %arg4[%c0_26, %c0_27, %c0_28] : memref<1x8x128xf32, #tpu.memory_space<vmem>>, vector<1x8x128xf32>
      %61 = vector.shape_cast %60 : vector<1x8x128xf32> to vector<8x128xf32>
      %62 = vector.shape_cast %59 : vector<8x128xf32> to vector<1x8x128xf32>
      tpu.vector_store %arg4[%c0_26, %c0_27, %c0_28], %62 {strides = array<i32>} : memref<1x8x128xf32, #tpu.memory_space<vmem>>, vector<1x8x128xf32>,
      %cst_29 = arith.constant 0.000000e+00 : f32
      %63 = vector.broadcast %cst_29 : f32 to vector<8x128xf32>
      %c0_30 = arith.constant 0 : index
      %c0_31 = arith.constant 0 : index
      %c0_32 = arith.constant 0 : index
      %64 = vector.load %arg5[%c0_30, %c0_31, %c0_32] : memref<1x8x128xf32, #tpu.memory_space<vmem>>, vector<1x8x128xf32>
      %65 = vector.shape_cast %64 : vector<1x8x128xf32> to vector<8x128xf32>
      %66 = vector.shape_cast %63 : vector<8x128xf32> to vector<1x8x128xf32>
      tpu.vector_store %arg5[%c0_30, %c0_31, %c0_32], %66 {strides = array<i32>} : memref<1x8x128xf32, #tpu.memory_space<vmem>>, vector<1x8x128xf32>,
    } else {
    }
    %c0 = arith.constant 0 : index
    %c0_1 = arith.constant 0 : index
    %3 = vector.load %arg2[%c0, %c0_1] : memref<8x128xf32, #tpu.memory_space<vmem>>, vector<8x128xf32>
    %c0_2 = arith.constant 0 : index
    %c0_3 = arith.constant 0 : index
    %4 = vector.load %arg3[%c0_2, %c0_3] : memref<8x128xf32, #tpu.memory_space<vmem>>, vector<8x128xf32>
    %c1_i32 = arith.constant 1 : i32
    %5 = arith.muli %arg0, %c1_i32 : i32
    %6 = arith.addi %5, %arg1 : i32
    %c1024_i32 = arith.constant 1024 : i32
    %7 = arith.muli %6, %c1024_i32 : i32
    %8 = tpu.iota {dimensions = array<i32: 0>} : vector<8x128xi32>
    %9 = tpu.iota {dimensions = array<i32: 1>} : vector<8x128xi32>
    %c128_i32 = arith.constant 128 : i32
    %10 = vector.broadcast %c128_i32 : i32 to vector<8x128xi32>
    %11 = arith.muli %8, %10 : vector<8x128xi32>
    %12 = vector.broadcast %7 : i32 to vector<8x128xi32>
    %13 = arith.addi %12, %11 : vector<8x128xi32>
    %14 = arith.addi %13, %9 : vector<8x128xi32>
    %c2048_i32 = arith.constant 2048 : i32
    %15 = vector.broadcast %c2048_i32 : i32 to vector<8x128xi32>
    %16 = arith.cmpi slt, %14, %15 : vector<8x128xi32>
    %cst = arith.constant -1.000000e+00 : f32
    %17 = vector.broadcast %cst : f32 to vector<8x128xf32>
    %18 = arith.cmpf one, %4, %17 : vector<8x128xf32>
    %19 = arith.andi %16, %18 : vector<8x128xi1>
    %cst_4 = arith.constant 0.000000e+00 : f32
    %20 = vector.broadcast %cst_4 : f32 to vector<8x128xf32>
    %21 = arith.subf %20, %3 : vector<8x128xf32>
    %cst_5 = arith.constant 0.000000e+00 : f32
    %22 = vector.broadcast %cst_5 : f32 to vector<8x128xf32>
    %23 = arith.maximumf %21, %22 : vector<8x128xf32>
    %24 = math.absf %3 : vector<8x128xf32>
    %cst_6 = arith.constant 0.000000e+00 : f32
    %25 = vector.broadcast %cst_6 : f32 to vector<8x128xf32>
    %26 = arith.subf %25, %24 : vector<8x128xf32>
    %27 = math.exp %26 : vector<8x128xf32>
    %28 = math.log1p %27 : vector<8x128xf32>
    %29 = arith.addf %23, %28 : vector<8x128xf32>
    %cst_7 = arith.constant 1.000000e+00 : f32
    %30 = vector.broadcast %cst_7 : f32 to vector<8x128xf32>
    %31 = arith.subf %30, %4 : vector<8x128xf32>
    %32 = arith.mulf %31, %3 : vector<8x128xf32>
    %cst_8 = arith.constant 5.000000e-01 : f32
    %33 = vector.broadcast %cst_8 : f32 to vector<8x128xf32>
    %34 = arith.mulf %33, %4 : vector<8x128xf32>
    %cst_9 = arith.constant 1.000000e+00 : f32
    %35 = vector.broadcast %cst_9 : f32 to vector<8x128xf32>
    %36 = arith.addf %35, %34 : vector<8x128xf32>
    %37 = arith.mulf %36, %29 : vector<8x128xf32>
    %38 = arith.addf %32, %37 : vector<8x128xf32>
    %cst_10 = arith.constant 0.000000e+00 : f32
    %39 = vector.broadcast %cst_10 : f32 to vector<8x128xf32>
    %40 = arith.select %19, %38, %39 : vector<8x128xi1>, vector<8x128xf32>
    %41 = arith.extui %19 : vector<8x128xi1> to vector<8x128xi32>
    %42 = arith.sitofp %41 : vector<8x128xi32> to vector<8x128xf32>
    %43 = vector.shape_cast %40 : vector<8x128xf32> to vector<1x8x128xf32>
    %cst_11 = arith.constant dense<0.000000e+00> : vector<8x128xf32>
    %44 = vector.multi_reduction <add>, %43, %cst_11 [0] : vector<1x8x128xf32> to vector<8x128xf32>
    %45 = vector.shape_cast %42 : vector<8x128xf32> to vector<1x8x128xf32>
    %cst_12 = arith.constant dense<0.000000e+00> : vector<8x128xf32>
    %46 = vector.multi_reduction <add>, %45, %cst_12 [0] : vector<1x8x128xf32> to vector<8x128xf32>
    %c0_13 = arith.constant 0 : index
    %c0_14 = arith.constant 0 : index
    %c0_15 = arith.constant 0 : index
    %47 = vector.load %arg4[%c0_13, %c0_14, %c0_15] : memref<1x8x128xf32, #tpu.memory_space<vmem>>, vector<1x8x128xf32>
    %48 = vector.shape_cast %47 : vector<1x8x128xf32> to vector<8x128xf32>
    %49 = arith.addf %48, %44 : vector<8x128xf32>
    %c0_16 = arith.constant 0 : index
    %c0_17 = arith.constant 0 : index
    %c0_18 = arith.constant 0 : index
    %50 = vector.load %arg4[%c0_16, %c0_17, %c0_18] : memref<1x8x128xf32, #tpu.memory_space<vmem>>, vector<1x8x128xf32>
    %51 = vector.shape_cast %50 : vector<1x8x128xf32> to vector<8x128xf32>
    %52 = vector.shape_cast %49 : vector<8x128xf32> to vector<1x8x128xf32>
    tpu.vector_store %arg4[%c0_16, %c0_17, %c0_18], %52 {strides = array<i32>} : memref<1x8x128xf32, #tpu.memory_space<vmem>>, vector<1x8x128xf32>,
    %c0_19 = arith.constant 0 : index
    %c0_20 = arith.constant 0 : index
    %c0_21 = arith.constant 0 : index
    %53 = vector.load %arg5[%c0_19, %c0_20, %c0_21] : memref<1x8x128xf32, #tpu.memory_space<vmem>>, vector<1x8x128xf32>
    %54 = vector.shape_cast %53 : vector<1x8x128xf32> to vector<8x128xf32>
    %55 = arith.addf %54, %46 : vector<8x128xf32>
    %c0_22 = arith.constant 0 : index
    %c0_23 = arith.constant 0 : index
    %c0_24 = arith.constant 0 : index
    %56 = vector.load %arg5[%c0_22, %c0_23, %c0_24] : memref<1x8x128xf32, #tpu.memory_space<vmem>>, vector<1x8x128xf32>
    %57 = vector.shape_cast %56 : vector<1x8x128xf32> to vector<8x128xf32>
    %58 = vector.shape_cast %55 : vector<8x128xf32> to vector<1x8x128xf32>
    tpu.vector_store %arg5[%c0_22, %c0_23, %c0_24], %58 {strides = array<i32>} : memref<1x8x128xf32, #tpu.memory_space<vmem>>, vector<1x8x128xf32>,
    return
  }
  func.func @transform_0(%arg0: i32, %arg1: i32) -> (i32, i32) {
    %c1_i32 = arith.constant 1 : i32
    %0 = arith.muli %arg0, %c1_i32 : i32
    %1 = arith.addi %0, %arg1 : i32
    %c1_i32_0 = arith.constant 1 : i32
    %2 = arith.minsi %1, %c1_i32_0 : i32
    %c0_i32 = arith.constant 0 : i32
    %c0_i32_1 = arith.constant 0 : i32
    return %2, %c0_i32 : i32, i32
  }
  func.func @transform_1(%arg0: i32, %arg1: i32) -> (i32, i32) {
    %c1_i32 = arith.constant 1 : i32
    %0 = arith.muli %arg0, %c1_i32 : i32
    %1 = arith.addi %0, %arg1 : i32
    %c1_i32_0 = arith.constant 1 : i32
    %2 = arith.minsi %1, %c1_i32_0 : i32
    %c0_i32 = arith.constant 0 : i32
    %c0_i32_1 = arith.constant 0 : i32
    return %2, %c0_i32 : i32, i32
  }
  func.func @transform_2(%arg0: i32, %arg1: i32) -> (i32, i32, i32) {
    %c0_i32 = arith.constant 0 : i32
    %c0_i32_0 = arith.constant 0 : i32
    %c0_i32_1 = arith.constant 0 : i32
    return %arg0, %c0_i32, %c0_i32_0 : i32, i32, i32
  }
  func.func @transform_3(%arg0: i32, %arg1: i32) -> (i32, i32, i32) {
    %c0_i32 = arith.constant 0 : i32
    %c0_i32_0 = arith.constant 0 : i32
    %c0_i32_1 = arith.constant 0 : i32
    return %arg0, %c0_i32, %c0_i32_0 : i32, i32, i32
  }
}

</mosaic_0001>

<bundles_post_ra>
// kernel: tpu_custom_call.1
= control target key start
LH: loop header
LB: loop body
LE: loop exit
PB: predicated region body
PF: predicated region fallthrough
CT: control target
= control target key end

     0   :  { %s1038_s0 = inlined_call_operand.hbm [shape: f32[16,128], index: 0, kind: input, shape index: {}]   ;;  %s1039_s1 = inlined_call_operand.hbm [shape: f32[16,128], index: 1, kind: input, shape index: {}]   ;;  %s1040_s2 = inlined_call_operand.hbm [shape: f32[2,8,128], index: 2, kind: output, shape index: {0}]   ;;  %s1041_s3 = inlined_call_operand.hbm [shape: f32[2,8,128], index: 3, kind: output, shape index: {1}]  }
   0x1   :  { %1044 = sst [smem:[#allocation17_spill]] %s1038_s0 }
   0x2   :  { %9 = vsyncpa [#allocation3], 0 }
   0x3   :  { %11 = vsyncpa [#allocation3 + $0x1], 0 }
   0x4   :  { %12 = vsyncpa [#allocation6], 0 }
   0x5   :  { %14 = vsyncpa [#allocation6 + $0x1], 0 }
   0x6   :  { %15 = vsyncpa [#allocation4], 0 }
   0x7   :  { %17 = vsyncpa [#allocation4 + $0x1], 0 }
   0x8   :  { %18 = vsyncpa [#allocation9], 0 }
   0x9   :  { %20 = vsyncpa [#allocation9 + $0x1], 0  ;;  %s844_s12 = smov 0   ;;  %s846_s13 = smov 0  }
   0xa   :  { %s848_s14 = smov 0   ;;  %s850_s15 = smov 0  }
   0xb   :  { %s852_s16 = smov 0   ;;  %s854_s17 = smov 0  }
   0xc   :  { %s856_s18 = smov 0   ;;  %s858_s19 = smov 0  }
   0xd   :  { %s860_s20 = smov 0  }
   0xe LB: > { %1045 = sst [smem:[#allocation14_spill]] %s817_s19  ;;  %s497_s21 = sadd.s32 4294967295, %s821_s20   ;;  %s821_s20 = sphi %s860_s20, %s26_s20   ;;  %s817_s19 = sphi %s858_s19, %s1057_s19   ;;  %s813_s18 = sphi %s856_s18, %s1056_s18   ;;  %s809_s17 = sphi %s854_s17, %s1063_s17   ;;  %s805_s16 = sphi %s852_s16, %s1062_s16   ;;  %s801_s15 = sphi %s850_s15, %s1061_s15   ;;  %s797_s14 = sphi %s848_s14, %s1060_s14   ;;  %s793_s13 = sphi %s846_s13, %s1059_s13   ;;  %s789_s12 = sphi %s844_s12, %s1058_s12  }
   0xf   : > { %s498_s22 = sadd.s32 4294967294, %s821_s20   ;;  %s38_s23 = sadd.s32 1, %s817_s19 }
  0x10   : > { %p43_p0 = scmp.lt.s32.totalorder %s817_s19, 1  ;;  %p40_p1 = scmp.ge.s32.totalorder %s38_s23, 2 }
  0x11   : > { %s51_s24 = sadd.s32 1, %s809_s17  ;;  %p58_p2 = scmp.ne.s32.totalorder %s809_s17, %s805_s16 }
  0x12   : > { %s893_s25 = scalar_select %p43_p0, %s817_s19, 1 }
  0x13   : > { %s1065_s23 = smov (%p40_p1, %s38_s23), 0  ;;  %p59_p3 = scmp.eq.s32.totalorder %s821_s20, 0 }
  0x14   : > { %1046 = sst [smem:[#allocation15_spill]] %s1065_s23  ;;  %p46_p4 = scmp.lt.s32.totalorder %s1065_s23, 1 }
  0x15   : > { %p64_p5 = scmp.ne.s32.totalorder %s805_s16, %s801_s15  ;;  %p902_p6 = por %p59_p3, %p58_p2 }
  0x16   : > { %p65_p7 = scmp.eq.s32.totalorder %s497_s21, 0  ;;  %s106_s29 = ssub.s32 %s817_s19, %s1065_s23 }
  0x17   : > { %s47_s27 = scalar_select %p46_p4, %s1065_s23, 1 }
  0x18   : > { %p907_p8 = por %p65_p7, %p64_p5  ;;  %p107_p9 = scmp.eq.s32.totalorder %s106_s29, 0 }
  0x19   : > { %s48_s30 = ssub.s32 %s893_s25, %s47_s27  ;;  %s109_s4 = sadd.s32 1, %s797_s14 }
  0x1a   : > { %p49_p10 = scmp.eq.s32.totalorder %s48_s30, 0  ;;  %p119_p11 = scmp.ne.s32.totalorder %s797_s14, %s793_s13 }
  0x1b   : > { %s916_s5 = scalar_select %p107_p9, %s797_s14, %s109_s4  }
  0x1c   : > { %s919_s6 = scalar_select %p49_p10, %s809_s17, %s51_s24  }
  0x1d   : > { %p120_p12 = scmp.eq.s32.totalorder %s497_s21, 1  ;;  %p125_p13 = scmp.ne.s32.totalorder %s793_s13, %s789_s12 }
  0x1e   : > { %1049 = sst [smem:[#allocation16_spill]] %s919_s6  ;;  %p126_p0 = scmp.eq.s32.totalorder %s498_s22, 1 }
  0x1f   : > { %p925_p1 = por %p120_p12, %p119_p11  ;;  %p500_p2 = scmp.ge.s32.totalorder %s821_s20, 2 }
  0x20   : > { %p930_p3 = por %p126_p0, %p125_p13  ;;  %p540_p4 = scmp.lt.s32.totalorder %s821_s20, 2 }
  0x21   : > { %s172_s9 = sand.u32 1, %s809_s17   ;;  %s502_s10 = sshll.u32 %s893_s25, 3 }
  0x22   : > { %s501_s11 = sshll.u32 %s172_s9, 3  ;;  %s1052_s0 = sld [smem:[#allocation17_spill]] }
  0x23   : > { %s176_s22 = scalar_lea.vmem [#allocation2], %s501_s11  ;;  %p527_p5 = pnand %p540_p4, %p902_p6 }
  0x24   : > { %s187_s29 = sshll.u32 %s176_s22, 4  ;;  %p505_p7 = scmp.ge.s32.totalorder %s821_s20, 1  ;;  %s188_s29 = int_to_ptr.vmem [resolvable:$true] %s187_s29 }
  0x25   : > { %p214_p9 = scmp.lt.s32.totalorder %s821_s20, 3  ;;  %s173_s30 = scalar_lea.sflag [#allocation3], %s172_s9 }
  0x26   : > { %s205_s25 = scalar_lea.hbm %s1039_s1, %s502_s10  ;;  %s198_s6 = scalar_lea.vmem [#allocation5], %s501_s11 }
  0x27   : > { %p215_p10 = pnand %p505_p7, %p214_p9  ;;  %s207_s19 = sshll.u32 %s205_s25, 4  ;;  %s208_s19 = int_to_ptr.hbm [resolvable:$true] %s207_s19 }
  0x28   : > { %s183_s24 = scalar_lea.hbm %s1052_s0, %s502_s10  ;;  %s209_s15 = sshll.u32 %s198_s6, 4  ;;  %s210_s15 = int_to_ptr.vmem [resolvable:$true] %s209_s15 }
  0x29   : > { %s185_s27 = sshll.u32 %s183_s24, 4  ;;  %s195_s21 = scalar_lea.sflag [#allocation6], %s172_s9  ;;  %s186_s27 = int_to_ptr.hbm [resolvable:$true] %s185_s27 }
  0x2a   : > { %529 = dma.hbm_to_vmem [thread:$0]  (!%p527_p5), %s186_s27, 128, %s188_s29, %s173_s30  }
  0x2b   : > { %532 = dma.hbm_to_vmem [thread:$0]  (!%p527_p5), %s208_s19, 128, %s210_s15, %s195_s21  }
  0x2c   : > { %218 = sbr.rel (%p215_p10) target bundleno = 90 (0x5a), region = 28  ;;  %s220_s26 = sand.u32 (!%p215_p10), 1, %s805_s16  }
  0x2d   : > { %s506_s24 = sshll.u32 (!%p215_p10), %s220_s26, 3  ;;  %s221_s22 = scalar_lea.sflag (!%p215_p10), [#allocation3], %s220_s26 }
  0x2e   : > { %s224_s0 = scalar_lea.vmem (!%p215_p10), [#allocation2], %s506_s24 }
  0x31   : > { %772 = dma.done.wait (%p907_p8), %s221_s22, 128  }
  0x32   : > { %774 = vsyncadd (%p907_p8), %s221_s22, 4294967168  ;;  %s231_s23 = scalar_lea.sflag [#allocation6], %s220_s26  ;;  %s234_s10 = scalar_lea.vmem [#allocation5], %s506_s24 }
  0x33   : > { %776 = dma.done.wait (%p907_p8), %s231_s23, 128  }
  0x34   : > { %778 = vsyncadd (%p907_p8), %s231_s23, 4294967168  ;;  %s510_s19 = sshll.u32 %s813_s18, 10  ;;  %v284_v0 = vlaneseq  ;;  %s958_s6 = sand.u32 1, %s793_s13   ;;  %v280_v6 = vld [vmem:[%s224_s0] sm:$0xff]  ;;  %v281_v7 = vld [vmem:[%s234_s10] sm:$0xff]  ;;  %v823_v13 = vmov 0.0  }
  0x35   : > { %v289_v2 = vstv %s510_s19  ;;  %s508_s9 = sshll.u32 %s958_s6, 3  ;;  %s514_s11 = sshll.u32 %s813_s18, 3  ;;  %vm293_vm0 = vcmp.ne.f32.partialorder %v281_v7, -1.0  ;;  %v297_v9 = vand.u32 2147483647, %v280_v6 }
  0x36   : > { %v285_v1 = vshrl.u32 %v284_v0, 7  ;;  %v287_v3 = vand.u32 127, %v284_v0  ;;  %s358_s29 = scalar_lea.hbm %s1041_s3, %s514_s11  ;;  %s267_s30 = scalar_lea.vmem [#allocation8], %s508_s9 }
  0x37   : > { %v298_v10 = vsub.f32 0.0, %v297_v9  ;;  %s360_s4 = sshll.u32 %s267_s30, 4  ;;  %s362_s25 = sshll.u32 %s358_s29, 4  ;;  %s361_s4 = int_to_ptr.vmem [resolvable:$true] %s360_s4  ;;  %s363_s25 = int_to_ptr.hbm [resolvable:$true] %s362_s25 }
  0x38   : > { %v288_v4 = vmul.u32 128, %v285_v1  ;;  %s334_s0 = scalar_lea.sflag [#allocation9], %s958_s6  ;;  %s693_s15 = sshra.s32 %s363_s25, 4  ;;  %s694_s15 = int_to_ptr.hbm [resolvable:$true] %s693_s15 }
  0x39   : > { %v299_v12 = vmul.f32 1.442695, %v298_v10  ;;  %s695_s21 = scalar_lea.hbm %s694_s15, 8  ;;  %s699_s22 = scalar_lea.hbm %s1041_s3, 16 }
  0x3a   : > { %v290_v5 = vadd.s32 %v289_v2, %v288_v4  ;;  %p696_p6 = scmp.ne.s32.totalorder %s694_s15, %s695_s21  ;;  %p700_p12 = scmp.lt.s32.totalorder %s694_s15, %s1041_s3 }
  0x3b   : > { %615 = vpow2.f32 %v299_v12  ;;  %p701_p13 = scmp.lt.s32.totalorder %s699_s22, %s695_s21 }
  0x3c   : > { %v291_v8 = vadd.s32 %v290_v5, %v287_v3  ;;  %p697_p8 = pnand %p696_p6, %p925_p1 }
  0x3d   : > { %p702_p0 = por %p701_p13, %p700_p12 }
  0x3e   : > { %vm292_vm1 = vcmp.lt.s32.totalorder %v291_v8, 2048  ;;  %p698_p11 = pneg %p697_p8 }
  0x3f   : > { %vm969_vm2 = vmand %vm292_vm1, %vm293_vm0 }
  0x40   : > { %v511_v14 = vsel %vm969_vm2, 1.0, %v823_v13  ;;  %p703_p4 = pnand %p702_p0, %p698_p11 }
  0x41   : > { %327 = vst [vmem:[%s267_s30] sm:$0xff] %v511_v14 }
  0x42   : > { %706 = shalt.err (!%p703_p4)
}
  0x43   : > { %523 = dma.vmem_to_hbm [thread:$0]  (%p925_p1), %s361_s4, 128, %s363_s25, %s334_s0   ;;  %v616_v15 = vpop.eup %615  ;;  %v295_v19 = vsub.f32 0.0, %v280_v6  ;;  %v313_v21 = vmul.f32 0.5, %v281_v7  ;;  %v311_v25 = vsub.f32 1.0, %v281_v7 }
  0x44   : > { %v301_v16 = vadd.f32 1.0, %v616_v15  ;;  %v304_v17 = vmul.f32 -0.5, %v616_v15  ;;  %v307_v20 = vand.u32 2147483647, %v616_v15  ;;  %s344_s27 = scalar_lea.hbm %s1040_s2, %s514_s11  ;;  %s260_s29 = scalar_lea.vmem [#allocation7], %s508_s9 }
  0x45   : > { %v296_v24 = vmax.f32 %v295_v19, 0.0  ;;  %v314_v27 = vadd.f32 1.0, %v313_v21  ;;  %v312_v30 = vmul.f32 %v311_v25, %v280_v6  ;;  %s346_s30 = sshll.u32 %s260_s29, 4  ;;  %s348_s4 = sshll.u32 %s344_s27, 4  ;;  %s347_s30 = int_to_ptr.vmem [resolvable:$true] %s346_s30  ;;  %s349_s4 = int_to_ptr.hbm [resolvable:$true] %s348_s4 }
  0x46   : > { %617 = vlog2.f32 %v301_v16  ;;  %v305_v18 = vadd.f32 1.0, %v304_v17  ;;  %vm308_vm3 = vcmp.lt.f32.partialorder %v307_v20, 0.0004427343  ;;  %s329_s25 = scalar_lea.sflag [#allocation4], %s958_s6  ;;  %s721_s0 = sshra.s32 %s349_s4, 4  ;;  %s722_s0 = int_to_ptr.hbm [resolvable:$true] %s721_s0 }
  0x47   : > { %s723_s18 = scalar_lea.hbm %s722_s0, 8  ;;  %s727_s9 = scalar_lea.hbm %s1040_s2, 16 }
  0x48   : > { %v306_v22 = vmul.f32 %v616_v15, %v305_v18  ;;  %p724_p5 = scmp.ne.s32.totalorder %s722_s0, %s723_s18  ;;  %p728_p10 = scmp.lt.s32.totalorder %s722_s0, %s1040_s2 }
  0x49   : > { %p729_p6 = scmp.lt.s32.totalorder %s727_s9, %s723_s18 }
  0x4a   : > { %p725_p7 = pnand %p724_p5, %p925_p1 }
  0x4b   : > { %p730_p8 = por %p729_p6, %p728_p10 }
  0x4c   : > { %v618_v23 = vpop.eup %617  ;;  %p726_p9 = pneg %p725_p7 }
  0x4d   : > { %v303_v26 = vmul.f32 0.6931472, %v618_v23 }
  0x4e   : > { %p731_p11 = pnand %p730_p8, %p726_p9 }
  0x4f   : > { %v309_v28 = vsel %vm308_vm3, %v306_v22, %v303_v26 }
  0x50   : > { %v310_v29 = vadd.f32 %v309_v28, %v296_v24 }
  0x52   : > { %v315_v31 = vmul.f32 %v314_v27, %v310_v29 }
  0x54   : > { %v316_v32 = vadd.f32 %v315_v31, %v312_v30 }
  0x56   : > { %v317_v33 = vsel %vm969_vm2, %v316_v32, 0.0 }
  0x57   : > { %324 = vst [vmem:[%s260_s29] sm:$0xff] %v317_v33 }
  0x58   : > { %734 = shalt.err (!%p731_p11)
}
  0x59   : > { %522 = dma.vmem_to_hbm [thread:$0]  (%p925_p1), %s347_s30, 128, %s349_s4, %s329_s25  }
  0x5a PF: > { %s374_s6 = sand.u32 1, %s789_s12   ;;  %p534_p12 = pnand %p500_p2, %p930_p3 }
  0x5b   : > { %s375_s24 = scalar_lea.sflag [#allocation4], %s374_s6 }
  0x5c   : > { %p535_p13 = pneg %p534_p12 }
  0x5e   : > { %780 = dma.done.wait (%p535_p13), %s375_s24, 128  }
  0x5f   : > { %782 = vsyncadd (%p535_p13), %s375_s24, 4294967168  ;;  %s385_s22 = scalar_lea.sflag [#allocation9], %s374_s6 }
  0x60   : > { %784 = dma.done.wait (%p535_p13), %s385_s22, 128  }
  0x61   : > { %786 = vsyncadd (%p535_p13), %s385_s22, 4294967168  ;;  %s26_s20 = sadd.s32 1, %s821_s20   ;;  %s1055_s7 = sld [smem:[#allocation16_spill]] }
  0x62   : > { %p23_p0 = scmp.ge.s32.totalorder %s26_s20, 4   ;;  %s1056_s18 = sld [smem:[#allocation14_spill]] }
  0x63   : > { %s1057_s19 = sld [smem:[#allocation15_spill]]  ;;  %s1058_s12 = smov %s793_s13 }
  0x64   : > { %s1059_s13 = smov %s797_s14  ;;  %s1060_s14 = smov %s916_s5 }
  0x65   : > { %s1061_s15 = smov %s805_s16  ;;  %s1062_s16 = smov %s809_s17 }
  0x66   :  { %25 = sbr.rel (!%p23_p0) target bundleno = 14 (0xe), region = 107 }
  0x67   : > { %s1063_s17 = smov %s1055_s7 }
  0x6b   :  { %391 = vsyncpa [#allocation3], 1 }
  0x6c   :  { %393 = vsyncpa [#allocation3 + $0x1], 1 }
  0x6d   :  { %394 = vsyncpa [#allocation6], 1 }
  0x6e   :  { %396 = vsyncpa [#allocation6 + $0x1], 1 }
  0x6f   :  { %397 = vsyncpa [#allocation4], 1 }
  0x70   :  { %399 = vsyncpa [#allocation4 + $0x1], 1 }
  0x71   :  { %400 = vsyncpa [#allocation9], 1 }
  0x72   :  { %402 = vsyncpa [#allocation9 + $0x1], 1 }

</bundles_post_ra>
